<compile_context>
chip_gen: v7x
topology: tpu7x:2x2x1
jax: 0.10.0
libtpu: 0.0.40
codegen_flags: <defaults>
</compile_context>

<pallas_src>
import jax
import jax.numpy as jnp
from jax.experimental import pallas as pl
from jax.experimental.pallas import tpu as pltpu

SMOOTH = 1e-6
LANES = 128
_CHUNK_MAX = 64   # rows per inner fori_loop step (multiple of every sublane tile)


def _round_up(x, m):
    return ((x + m - 1) // m) * m


def _sublane_multiple(dtype):
    s = jnp.dtype(dtype).itemsize
    if s >= 4:
        return 8
    if s == 2:
        return 16
    return 32


def _make_iou_kernel(rows, tile_rows, chunk_rows, tiles_per_split):
    """Kernel with static sizes baked in."""
    n_chunks = tile_rows // chunk_rows
    sub_blocks = chunk_rows // 8          # (chunk_rows,128) -> (sub_blocks,8,128)

    def kernel(pred_ref, true_ref, inter_ref, total_ref):
        c = pl.program_id(0)              # megacore split axis ("parallel")
        i = pl.program_id(1)              # sequential reduction axis

        @pl.when(i == 0)
        def _():
            inter_ref[...] = jnp.zeros_like(inter_ref)
            total_ref[...] = jnp.zeros_like(total_ref)

        # Global starting row of this tile, computed from the UNCLAMPED block
        # position so clamped overhang blocks (megacore remainder) are zeroed.
        base_row = (c * tiles_per_split + i) * tile_rows

        def load_chunk(j):
            off = pl.multiple_of(j * chunk_rows, chunk_rows)
            x = pred_ref[pl.ds(off, chunk_rows), :].astype(jnp.float32)
            # sigmoid(x) = 0.5*(1+tanh(x/2)): one EUP transcendental/element
            # (exp + divide would be two).
            p = 0.5 * (jnp.tanh(0.5 * x) + 1.0)
            t = true_ref[pl.ds(off, chunk_rows), :].astype(jnp.float32)
            return p, t

        def reduce_into(p, t, carry):
            inter_acc, total_acc = carry
            p3 = p.reshape(sub_blocks, 8, LANES)
            t3 = t.reshape(sub_blocks, 8, LANES)
            # Leading-axis reduction only (whole-vreg VPU adds); the
            # (8,128)->scalar reduction happens once, in the JAX epilogue.
            return (inter_acc + jnp.sum(p3 * t3, axis=0),
                    total_acc + jnp.sum(p3 + t3, axis=0))

        zero = jnp.zeros((8, LANES), jnp.float32)

        @pl.when(base_row + tile_rows <= rows)       # interior tile: no mask
        def _():
            def body(j, carry):
                p, t = load_chunk(j)
                return reduce_into(p, t, carry)
            inter_acc, total_acc = jax.lax.fori_loop(0, n_chunks, body,
                                                     (zero, zero))
            inter_ref[0] += inter_acc
            total_ref[0] += total_acc

        @pl.when(base_row + tile_rows > rows)        # tail / overhang tile
        def _():
            row_ids = jax.lax.broadcasted_iota(jnp.int32, (chunk_rows, LANES), 0)

            def body(j, carry):
                p, t = load_chunk(j)
                # Row-based comparison (no *128) keeps int32 comfortably in
                # range even for multi-GB inputs; remaining <= 0 zeroes
                # duplicated overhang blocks entirely.
                remaining = rows - (base_row + j * chunk_rows)
                valid = row_ids < remaining
                return reduce_into(jnp.where(valid, p, 0.0),
                                   jnp.where(valid, t, 0.0), carry)
            inter_acc, total_acc = jax.lax.fori_loop(0, n_chunks, body,
                                                     (zero, zero))
            inter_ref[0] += inter_acc
            total_ref[0] += total_acc

    return kernel


def iou_loss(pred_mask, true_mask, *, tile_rows=4096, n_splits=None,
             force_pallas=False, min_pallas_elems=1 << 18):
    """1 - IoU over sigmoid(pred) and true; matches PyTorch IoULoss.forward."""
    pred = pred_mask.reshape(-1)
    true = true_mask.reshape(-1)
    n = pred.shape[0]

    sub = max(_sublane_multiple(pred.dtype), _sublane_multiple(true.dtype))
    rows = n // LANES                      # full 128-lane rows

    # Small inputs (or too few rows to tile legally): kernel launch + pipeline
    # setup dominates; a fused XLA reduction is faster.
    if (not force_pallas and n < min_pallas_elems) or rows < sub:
        p = jax.nn.sigmoid(pred.astype(jnp.float32))
        t = true.astype(jnp.float32)
        intersection = jnp.sum(p * t)
        total = jnp.sum(p) + jnp.sum(t)
        union = total - intersection
        return 1.0 - (intersection + SMOOTH) / (union + SMOOTH)

    # 128-aligned prefix for the kernel (no jnp.pad: when n % 128 == 0 this is
    # a free reshape; the <128-element ragged tail is summed in plain JAX).
    n_k = rows * LANES
    pred2 = pred[:n_k].reshape(rows, LANES)
    true2 = true[:n_k].reshape(rows, LANES)

    # Tile height: MiB-scale blocks to amortize per-step pipeline overhead;
    # multiple of the inner chunk and never exceeding rows, so partial blocks
    # only appear at the true edge (masked in-kernel).
    if rows >= _CHUNK_MAX:
        chunk = _CHUNK_MAX
        tr = min(_round_up(max(tile_rows, chunk), chunk),
                 (rows // chunk) * chunk)
    else:
        chunk = (rows // sub) * sub
        tr = chunk
    total_blocks = (rows + tr - 1) // tr

    # Megacore split: only useful on 2-TensorCore chips (v7x); on 1-TC chips a
    # second split just duplicates DMA for zero benefit.
    if n_splits is None:
        try:
            kind = jax.devices()[0].device_kind.lower()
        except Exception:
            kind = ""
        n_splits = 2 if "v7" in kind else 1
    ns = max(1, min(n_splits, total_blocks))
    tps = (total_blocks + ns - 1) // ns
    needs_clamp = ns * tps != total_blocks

    def in_map(c, i):
        b = c * tps + i
        if needs_clamp:
            # Overhang blocks re-read the last valid block; the in-kernel mask
            # (computed from the unclamped position) zeroes their contribution.
            b = jnp.minimum(b, total_blocks - 1)
        return (b, 0)

    kernel = _make_iou_kernel(rows, tr, chunk, tps)

    inter_p, total_p = pl.pallas_call(
        kernel,
        out_shape=(
            jax.ShapeDtypeStruct((ns, 8, LANES), jnp.float32),
            jax.ShapeDtypeStruct((ns, 8, LANES), jnp.float32),
        ),
        grid_spec=pltpu.PrefetchScalarGridSpec(
            num_scalar_prefetch=0,
            grid=(ns, tps),
            in_specs=[
                pl.BlockSpec((tr, LANES), in_map),
                pl.BlockSpec((tr, LANES), in_map),
            ],
            out_specs=(
                pl.BlockSpec((1, 8, LANES), lambda c, i: (c, 0, 0)),
                pl.BlockSpec((1, 8, LANES), lambda c, i: (c, 0, 0)),
            ),
        ),
        compiler_params=pltpu.CompilerParams(
            dimension_semantics=("parallel", "arbitrary"),
        ),
    )(pred2, true2)

    # Tiny epilogue: cross-core + cross-sublane/lane reduce, ragged tail, IoU.
    intersection = jnp.sum(inter_p)
    total = jnp.sum(total_p)
    if n_k < n:
        p_tail = jax.nn.sigmoid(pred[n_k:].astype(jnp.float32))
        t_tail = true[n_k:].astype(jnp.float32)
        intersection = intersection + jnp.sum(p_tail * t_tail)
        total = total + jnp.sum(p_tail) + jnp.sum(t_tail)

    union = total - intersection
    iou = (intersection + SMOOTH) / (union + SMOOTH)
    return 1.0 - iou


def _iou_loss_ref(pred_mask, true_mask):
    p = jax.nn.sigmoid(pred_mask).reshape(-1).astype(jnp.float32)
    t = true_mask.reshape(-1).astype(jnp.float32)
    inter = jnp.sum(p * t)
    total = jnp.sum(p) + jnp.sum(t)
    union = total - inter
    return 1.0 - (inter + SMOOTH) / (union + SMOOTH)


if __name__ == "__main__":
    key = jax.random.PRNGKey(0)
    k1, k2, k3, k4 = jax.random.split(key, 4)

    # Force the Pallas path even at test-size inputs (default would take the
    # small-n pure-JAX fast path).
    loss_fn = jax.jit(lambda p, t: iou_loss(p, t, force_pallas=True))

    # NCHW, small shapes: batch=2, channels=4, spatial=16x16 -> 2048 elements
    pred_mask = jax.random.normal(k1, (2, 4, 16, 16), dtype=jnp.float32)
    true_mask = (jax.random.uniform(k2, (2, 4, 16, 16)) > 0.5).astype(jnp.float32)
    loss = jax.block_until_ready(loss_fn(pred_mask, true_mask))
    ref = jax.block_until_ready(_iou_loss_ref(pred_mask, true_mask))
    assert jnp.allclose(loss, ref, rtol=1e-5, atol=1e-6), (loss, ref)

    # Ragged size (1155 elements, not a multiple of 128): exercises the
    # partial-edge-block mask and the JAX tail path.
    pred_b = jax.random.normal(k3, (3, 5, 7, 11), dtype=jnp.float32)
    true_b = (jax.random.uniform(k4, (3, 5, 7, 11)) > 0.5).astype(jnp.float32)
    loss_b = jax.block_until_ready(loss_fn(pred_b, true_b))
    ref_b = jax.block_until_ready(_iou_loss_ref(pred_b, true_b))
    assert jnp.allclose(loss_b, ref_b, rtol=1e-5, atol=1e-6), (loss_b, ref_b)

    print("KERNEL_OK")
</pallas_src>

<mosaic_0001>
module attributes {stable_mosaic.version = 11 : i64} {
  func.func @kernel(%arg0: i32, %arg1: i32, %arg2: memref<16x128xf32, #tpu.memory_space<vmem>>, %arg3: memref<16x128xf32, #tpu.memory_space<vmem>>, %arg4: memref<1x8x128xf32, #tpu.memory_space<vmem>>, %arg5: memref<1x8x128xf32, #tpu.memory_space<vmem>>) attributes {dimension_semantics = [#tpu.dimension_semantics<parallel>, #tpu.dimension_semantics<arbitrary>], iteration_bounds = array<i64: 1, 1>, scalar_prefetch = 0 : i64, scratch_operands = 0 : i64, tpu.core_type = #tpu.core_type<tc>, window_params = [{transform_indices = @transform_0, window_bounds = array<i64: 16, 128>}, {transform_indices = @transform_1, window_bounds = array<i64: 16, 128>}, {transform_indices = @transform_2, window_bounds = array<i64: 1, 8, 128>}, {transform_indices = @transform_3, window_bounds = array<i64: 1, 8, 128>}]} {
    %c0_i32 = arith.constant 0 : i32
    %0 = arith.cmpi eq, %arg1, %c0_i32 : i32
    %1 = arith.extui %0 : i1 to i32
    %c0_i32_0 = arith.constant 0 : i32
    %2 = arith.cmpi ne, %1, %c0_i32_0 : i32
    scf.if %2 {
      %cst_7 = arith.constant 0.000000e+00 : f32
      %15 = vector.broadcast %cst_7 : f32 to vector<1x8x128xf32>
      %c0 = arith.constant 0 : index
      %c0_8 = arith.constant 0 : index
      %c0_9 = arith.constant 0 : index
      %16 = vector.load %arg4[%c0, %c0_8, %c0_9] : memref<1x8x128xf32, #tpu.memory_space<vmem>>, vector<1x8x128xf32>
      tpu.vector_store %arg4[%c0, %c0_8, %c0_9], %15 {strides = array<i32>} : memref<1x8x128xf32, #tpu.memory_space<vmem>>, vector<1x8x128xf32>,
      %cst_10 = arith.constant 0.000000e+00 : f32
      %17 = vector.broadcast %cst_10 : f32 to vector<1x8x128xf32>
      %c0_11 = arith.constant 0 : index
      %c0_12 = arith.constant 0 : index
      %c0_13 = arith.constant 0 : index
      %18 = vector.load %arg5[%c0_11, %c0_12, %c0_13] : memref<1x8x128xf32, #tpu.memory_space<vmem>>, vector<1x8x128xf32>
      tpu.vector_store %arg5[%c0_11, %c0_12, %c0_13], %17 {strides = array<i32>} : memref<1x8x128xf32, #tpu.memory_space<vmem>>, vector<1x8x128xf32>,
    } else {
    }
    %c1_i32 = arith.constant 1 : i32
    %3 = arith.muli %arg0, %c1_i32 : i32
    %4 = arith.addi %3, %arg1 : i32
    %c16_i32 = arith.constant 16 : i32
    %5 = arith.muli %4, %c16_i32 : i32
    %cst = arith.constant 0.000000e+00 : f32
    %6 = vector.broadcast %cst : f32 to vector<8x128xf32>
    %c16_i32_1 = arith.constant 16 : i32
    %7 = arith.addi %5, %c16_i32_1 : i32
    %c16_i32_2 = arith.constant 16 : i32
    %8 = arith.cmpi sle, %7, %c16_i32_2 : i32
    %9 = arith.extui %8 : i1 to i32
    %c0_i32_3 = arith.constant 0 : i32
    %10 = arith.cmpi ne, %9, %c0_i32_3 : i32
    scf.if %10 {
      %c0_i32_7 = arith.constant 0 : i32
      %c16_i32_8 = arith.constant 16 : i32
      %15 = arith.muli %c0_i32_7, %c16_i32_8 : i32
      %16 = tpu.assume_multiple %15, 16 : i32
      %17 = arith.index_cast %16 : i32 to index
      %c0 = arith.constant 0 : index
      %18 = vector.load %arg2[%17, %c0] : memref<16x128xf32, #tpu.memory_space<vmem>>, vector<16x128xf32>
      %cst_9 = arith.constant 5.000000e-01 : f32
      %19 = vector.broadcast %cst_9 : f32 to vector<16x128xf32>
      %20 = arith.mulf %19, %18 : vector<16x128xf32>
      %21 = math.tanh %20 : vector<16x128xf32>
      %cst_10 = arith.constant 1.000000e+00 : f32
      %22 = vector.broadcast %cst_10 : f32 to vector<16x128xf32>
      %23 = arith.addf %21, %22 : vector<16x128xf32>
      %cst_11 = arith.constant 5.000000e-01 : f32
      %24 = vector.broadcast %cst_11 : f32 to vector<16x128xf32>
      %25 = arith.mulf %24, %23 : vector<16x128xf32>
      %26 = arith.index_cast %16 : i32 to index
      %c0_12 = arith.constant 0 : index
      %27 = vector.load %arg3[%26, %c0_12] : memref<16x128xf32, #tpu.memory_space<vmem>>, vector<16x128xf32>
      %28 = vector.shape_cast %25 : vector<16x128xf32> to vector<2x8x128xf32>
      %29 = vector.shape_cast %27 : vector<16x128xf32> to vector<2x8x128xf32>
      %30 = arith.mulf %28, %29 : vector<2x8x128xf32>
      %cst_13 = arith.constant dense<0.000000e+00> : vector<8x128xf32>
      %31 = vector.multi_reduction <add>, %30, %cst_13 [0] : vector<2x8x128xf32> to vector<8x128xf32>
      %32 = arith.addf %6, %31 : vector<8x128xf32>
      %33 = arith.addf %28, %29 : vector<2x8x128xf32>
      %cst_14 = arith.constant dense<0.000000e+00> : vector<8x128xf32>
      %34 = vector.multi_reduction <add>, %33, %cst_14 [0] : vector<2x8x128xf32> to vector<8x128xf32>
      %35 = arith.addf %6, %34 : vector<8x128xf32>
      %c1_i32_15 = arith.constant 1 : i32
      %c0_16 = arith.constant 0 : index
      %c0_17 = arith.constant 0 : index
      %c0_18 = arith.constant 0 : index
      %36 = vector.load %arg4[%c0_16, %c0_17, %c0_18] : memref<1x8x128xf32, #tpu.memory_space<vmem>>, vector<1x8x128xf32>
      %37 = vector.shape_cast %36 : vector<1x8x128xf32> to vector<8x128xf32>
      %38 = arith.addf %37, %32 : vector<8x128xf32>
      %c0_19 = arith.constant 0 : index
      %c0_20 = arith.constant 0 : index
      %c0_21 = arith.constant 0 : index
      %39 = vector.load %arg4[%c0_19, %c0_20, %c0_21] : memref<1x8x128xf32, #tpu.memory_space<vmem>>, vector<1x8x128xf32>
      %40 = vector.shape_cast %39 : vector<1x8x128xf32> to vector<8x128xf32>
      %41 = vector.shape_cast %38 : vector<8x128xf32> to vector<1x8x128xf32>
      tpu.vector_store %arg4[%c0_19, %c0_20, %c0_21], %41 {strides = array<i32>} : memref<1x8x128xf32, #tpu.memory_space<vmem>>, vector<1x8x128xf32>,
      %c0_22 = arith.constant 0 : index
      %c0_23 = arith.constant 0 : index
      %c0_24 = arith.constant 0 : index
      %42 = vector.load %arg5[%c0_22, %c0_23, %c0_24] : memref<1x8x128xf32, #tpu.memory_space<vmem>>, vector<1x8x128xf32>
      %43 = vector.shape_cast %42 : vector<1x8x128xf32> to vector<8x128xf32>
      %44 = arith.addf %43, %35 : vector<8x128xf32>
      %c0_25 = arith.constant 0 : index
      %c0_26 = arith.constant 0 : index
      %c0_27 = arith.constant 0 : index
      %45 = vector.load %arg5[%c0_25, %c0_26, %c0_27] : memref<1x8x128xf32, #tpu.memory_space<vmem>>, vector<1x8x128xf32>
      %46 = vector.shape_cast %45 : vector<1x8x128xf32> to vector<8x128xf32>
      %47 = vector.shape_cast %44 : vector<8x128xf32> to vector<1x8x128xf32>
      tpu.vector_store %arg5[%c0_25, %c0_26, %c0_27], %47 {strides = array<i32>} : memref<1x8x128xf32, #tpu.memory_space<vmem>>, vector<1x8x128xf32>,
    } else {
    }
    %c16_i32_4 = arith.constant 16 : i32
    %11 = arith.addi %5, %c16_i32_4 : i32
    %c16_i32_5 = arith.constant 16 : i32
    %12 = arith.cmpi sgt, %11, %c16_i32_5 : i32
    %13 = arith.extui %12 : i1 to i32
    %c0_i32_6 = arith.constant 0 : i32
    %14 = arith.cmpi ne, %13, %c0_i32_6 : i32
    scf.if %14 {
      %15 = tpu.iota {dimensions = array<i32: 0>} : vector<16x128xi32>
      %c0_i32_7 = arith.constant 0 : i32
      %c16_i32_8 = arith.constant 16 : i32
      %16 = arith.muli %c0_i32_7, %c16_i32_8 : i32
      %17 = tpu.assume_multiple %16, 16 : i32
      %18 = arith.index_cast %17 : i32 to index
      %c0 = arith.constant 0 : index
      %19 = vector.load %arg2[%18, %c0] : memref<16x128xf32, #tpu.memory_space<vmem>>, vector<16x128xf32>
      %cst_9 = arith.constant 5.000000e-01 : f32
      %20 = vector.broadcast %cst_9 : f32 to vector<16x128xf32>
      %21 = arith.mulf %20, %19 : vector<16x128xf32>
      %22 = math.tanh %21 : vector<16x128xf32>
      %cst_10 = arith.constant 1.000000e+00 : f32
      %23 = vector.broadcast %cst_10 : f32 to vector<16x128xf32>
      %24 = arith.addf %22, %23 : vector<16x128xf32>
      %cst_11 = arith.constant 5.000000e-01 : f32
      %25 = vector.broadcast %cst_11 : f32 to vector<16x128xf32>
      %26 = arith.mulf %25, %24 : vector<16x128xf32>
      %27 = arith.index_cast %17 : i32 to index
      %c0_12 = arith.constant 0 : index
      %28 = vector.load %arg3[%27, %c0_12] : memref<16x128xf32, #tpu.memory_space<vmem>>, vector<16x128xf32>
      %c16_i32_13 = arith.constant 16 : i32
      %29 = arith.muli %c0_i32_7, %c16_i32_13 : i32
      %30 = arith.addi %5, %29 : i32
      %c16_i32_14 = arith.constant 16 : i32
      %31 = arith.subi %c16_i32_14, %30 : i32
      %32 = vector.broadcast %31 : i32 to vector<16x128xi32>
      %33 = arith.cmpi slt, %15, %32 : vector<16x128xi32>
      %cst_15 = arith.constant 0.000000e+00 : f32
      %34 = vector.broadcast %cst_15 : f32 to vector<16x128xf32>
      %35 = arith.select %33, %26, %34 : vector<16x128xi1>, vector<16x128xf32>
      %cst_16 = arith.constant 0.000000e+00 : f32
      %36 = vector.broadcast %cst_16 : f32 to vector<16x128xf32>
      %37 = arith.select %33, %28, %36 : vector<16x128xi1>, vector<16x128xf32>
      %38 = vector.shape_cast %35 : vector<16x128xf32> to vector<2x8x128xf32>
      %39 = vector.shape_cast %37 : vector<16x128xf32> to vector<2x8x128xf32>
      %40 = arith.mulf %38, %39 : vector<2x8x128xf32>
      %cst_17 = arith.constant dense<0.000000e+00> : vector<8x128xf32>
      %41 = vector.multi_reduction <add>, %40, %cst_17 [0] : vector<2x8x128xf32> to vector<8x128xf32>
      %42 = arith.addf %6, %41 : vector<8x128xf32>
      %43 = arith.addf %38, %39 : vector<2x8x128xf32>
      %cst_18 = arith.constant dense<0.000000e+00> : vector<8x128xf32>
      %44 = vector.multi_reduction <add>, %43, %cst_18 [0] : vector<2x8x128xf32> to vector<8x128xf32>
      %45 = arith.addf %6, %44 : vector<8x128xf32>
      %c1_i32_19 = arith.constant 1 : i32
      %c0_20 = arith.constant 0 : index
      %c0_21 = arith.constant 0 : index
      %c0_22 = arith.constant 0 : index
      %46 = vector.load %arg4[%c0_20, %c0_21, %c0_22] : memref<1x8x128xf32, #tpu.memory_space<vmem>>, vector<1x8x128xf32>
      %47 = vector.shape_cast %46 : vector<1x8x128xf32> to vector<8x128xf32>
      %48 = arith.addf %47, %42 : vector<8x128xf32>
      %c0_23 = arith.constant 0 : index
      %c0_24 = arith.constant 0 : index
      %c0_25 = arith.constant 0 : index
      %49 = vector.load %arg4[%c0_23, %c0_24, %c0_25] : memref<1x8x128xf32, #tpu.memory_space<vmem>>, vector<1x8x128xf32>
      %50 = vector.shape_cast %49 : vector<1x8x128xf32> to vector<8x128xf32>
      %51 = vector.shape_cast %48 : vector<8x128xf32> to vector<1x8x128xf32>
      tpu.vector_store %arg4[%c0_23, %c0_24, %c0_25], %51 {strides = array<i32>} : memref<1x8x128xf32, #tpu.memory_space<vmem>>, vector<1x8x128xf32>,
      %c0_26 = arith.constant 0 : index
      %c0_27 = arith.constant 0 : index
      %c0_28 = arith.constant 0 : index
      %52 = vector.load %arg5[%c0_26, %c0_27, %c0_28] : memref<1x8x128xf32, #tpu.memory_space<vmem>>, vector<1x8x128xf32>
      %53 = vector.shape_cast %52 : vector<1x8x128xf32> to vector<8x128xf32>
      %54 = arith.addf %53, %45 : vector<8x128xf32>
      %c0_29 = arith.constant 0 : index
      %c0_30 = arith.constant 0 : index
      %c0_31 = arith.constant 0 : index
      %55 = vector.load %arg5[%c0_29, %c0_30, %c0_31] : memref<1x8x128xf32, #tpu.memory_space<vmem>>, vector<1x8x128xf32>
      %56 = vector.shape_cast %55 : vector<1x8x128xf32> to vector<8x128xf32>
      %57 = vector.shape_cast %54 : vector<8x128xf32> to vector<1x8x128xf32>
      tpu.vector_store %arg5[%c0_29, %c0_30, %c0_31], %57 {strides = array<i32>} : memref<1x8x128xf32, #tpu.memory_space<vmem>>, vector<1x8x128xf32>,
    } else {
    }
    return
  }
  func.func @transform_0(%arg0: i32, %arg1: i32) -> (i32, i32) {
    %c1_i32 = arith.constant 1 : i32
    %0 = arith.muli %arg0, %c1_i32 : i32
    %1 = arith.addi %0, %arg1 : i32
    %c0_i32 = arith.constant 0 : i32
    %c0_i32_0 = arith.constant 0 : i32
    return %1, %c0_i32 : i32, i32
  }
  func.func @transform_1(%arg0: i32, %arg1: i32) -> (i32, i32) {
    %c1_i32 = arith.constant 1 : i32
    %0 = arith.muli %arg0, %c1_i32 : i32
    %1 = arith.addi %0, %arg1 : i32
    %c0_i32 = arith.constant 0 : i32
    %c0_i32_0 = arith.constant 0 : i32
    return %1, %c0_i32 : i32, i32
  }
  func.func @transform_2(%arg0: i32, %arg1: i32) -> (i32, i32, i32) {
    %c0_i32 = arith.constant 0 : i32
    %c0_i32_0 = arith.constant 0 : i32
    %c0_i32_1 = arith.constant 0 : i32
    return %arg0, %c0_i32, %c0_i32_0 : i32, i32, i32
  }
  func.func @transform_3(%arg0: i32, %arg1: i32) -> (i32, i32, i32) {
    %c0_i32 = arith.constant 0 : i32
    %c0_i32_0 = arith.constant 0 : i32
    %c0_i32_1 = arith.constant 0 : i32
    return %arg0, %c0_i32, %c0_i32_0 : i32, i32, i32
  }
}

</mosaic_0001>

<bundles_post_ra>
// kernel: _lambda_.1
= control target key start
LH: loop header
LB: loop body
LE: loop exit
PB: predicated region body
PF: predicated region fallthrough
CT: control target
= control target key end

     0   :  { %s200_s0 = inlined_call_operand.vmem [shape: f32[16,128], index: 0, kind: input, shape index: {}]   ;;  %s201_s1 = inlined_call_operand.vmem [shape: f32[16,128], index: 1, kind: input, shape index: {}]   ;;  %s202_s2 = inlined_call_operand.vmem [shape: f32[1,8,128], index: 2, kind: output, shape index: {0}]   ;;  %s203_s3 = inlined_call_operand.vmem [shape: f32[1,8,128], index: 3, kind: output, shape index: {1}]  }
   0x1   :  { %v70_v0 = vld [vmem:[%s200_s0] sm:$0xff]  ;;  %v71_v1 = vld [vmem:[%s200_s0 + $0x8] sm:$0xff] }
   0x2   :  { %v72_v2 = vmul.f32 0.5, %v70_v0  ;;  %v73_v3 = vmul.f32 0.5, %v71_v1  ;;  %v80_v8 = vld [vmem:[%s201_s1] sm:$0xff]  ;;  %v81_v10 = vld [vmem:[%s201_s1 + $0x8] sm:$0xff] }
   0x4   :  { %158 = vtanh.f32 %v72_v2 }
   0x5   :  { %160 = vtanh.f32 %v73_v3 }
   0xe   :  { %v159_v4 = vpop.eup %158 }
   0xf   :  { %v161_v5 = vpop.eup %160  ;;  %v76_v6 = vadd.f32 1.0, %v159_v4 }
  0x10   :  { %v77_v7 = vadd.f32 1.0, %v161_v5 }
  0x11   :  { %v78_v9 = vmul.f32 0.5, %v76_v6 }
  0x12   :  { %v79_v11 = vmul.f32 0.5, %v77_v7 }
  0x13   :  { %v82_v12 = vmul.f32 %v80_v8, %v78_v9  ;;  %v86_v13 = vadd.f32 %v80_v8, %v78_v9 }
  0x14   :  { %v83_v14 = vmul.f32 %v81_v10, %v79_v11  ;;  %v87_v15 = vadd.f32 %v81_v10, %v79_v11 }
  0x16   :  { %v84_v16 = vadd.f32 %v83_v14, %v82_v12  ;;  %v88_v17 = vadd.f32 %v87_v15, %v86_v13 }
  0x18   :  { %92 = vst [vmem:[%s202_s2] sm:$0xff] %v84_v16  ;;  %95 = vst [vmem:[%s203_s3] sm:$0xff] %v88_v17 }

</bundles_post_ra>
